<compile_context>
chip_gen: v6e
topology: v6e:2x2x1
jax: 0.10.0
libtpu: 0.0.40
codegen_flags: <defaults>
</compile_context>

<pallas_src>
import jax
import jax.numpy as jnp
import numpy as np
from jax.experimental import pallas as pl
from jax.experimental.pallas import tpu as pltpu  # noqa: F401  (TPU backend)


def _verts_kernel(logit_t_ref, bnd_t_ref, v3_t_ref, v2_t_ref):
    """logit_t_ref: (2, V) f32, bnd_t_ref: (2, 4) f32,
    v3_t_ref: (3, V) f32, v2_t_ref: (2, V) f32.  V on the lane axis."""
    V = logit_t_ref.shape[1]
    # verts_2d = sigmoid(logit) * 2 - 1   (lane-dense: 2 sublanes x V lanes)
    v2 = jax.nn.sigmoid(logit_t_ref[...]) * 2.0 - 1.0                # (2, V)
    # verts_3d = pad(verts_2d, [0, 1], value=1.0)  -> one full-tile store
    ones_row = jnp.ones((1, V), dtype=v3_t_ref.dtype)
    v3_t_ref[...] = jnp.concatenate([v2.astype(v3_t_ref.dtype), ones_row], axis=0)
    v2_t_ref[...] = v2.astype(v2_t_ref.dtype)
    # verts_2d[:4] = boundary  -> direct sub-store over the first 4 vertex columns
    b = bnd_t_ref[...]                                               # (2, 4)
    v3_t_ref[0:2, 0:4] = b
    v2_t_ref[0:2, 0:4] = b


@jax.jit
def _compute_verts(verts_logit: jax.Array, boundary: jax.Array):
    """Returns (verts_3d (V,3), verts_2d_t (2,V)). Transposes fuse inside jit."""
    V = verts_logit.shape[0]
    dt = verts_logit.dtype
    logit_t = verts_logit.T          # (2, V) — lane-dense layout plumbing
    bnd_t = boundary.T               # (2, 4) — natural boundary, no padding

    v3_t, v2_t = pl.pallas_call(
        _verts_kernel,
        out_shape=(jax.ShapeDtypeStruct((3, V), dt),
                   jax.ShapeDtypeStruct((2, V), dt)),
        grid=(1,),
        in_specs=[
            pl.BlockSpec((2, V), lambda i: (0, 0)),   # block == full array dims
            pl.BlockSpec((2, 4), lambda i: (0, 0)),
        ],
        out_specs=(
            pl.BlockSpec((3, V), lambda i: (0, 0)),
            pl.BlockSpec((2, V), lambda i: (0, 0)),
        ),
    )(logit_t, bnd_t)
    return v3_t.T, v2_t


def make_faces(verts_2d_np: np.ndarray) -> np.ndarray:
    """Host-side Delaunay triangulation (matches torch make_faces semantics).
    Returns (F, 3) int64 simplices."""
    # TODO(synk): scipy.spatial.Delaunay (qhull) is host-side with a
    # data-dependent output shape — no Pallas/TPU equivalent; computed on CPU.
    try:
        import scipy.spatial  # noqa: PLC0415
    except ImportError:
        return np.zeros((0, 3), dtype=np.int64)
    simplices = scipy.spatial.Delaunay(
        verts_2d_np.astype(np.float64),
        qhull_options='i Qt Qbb Qc Qz Q12').simplices
    return simplices.astype(np.int64)


def screen_triangulation_forward(verts_logit, verts_features, boundary):
    """Returns (verts_3d (V,3) f32, faces (F,3) i64 numpy, verts_features (V,D) f32)."""
    verts_3d, verts_2d_t = _compute_verts(verts_logit, boundary)
    # Only verts_2d is synced to host for qhull; verts_3d / features remain
    # device futures so any downstream device work can overlap the host
    # triangulation latency.
    verts_2d_host = np.asarray(verts_2d_t).T     # (V, 2), host-side transpose
    faces = make_faces(verts_2d_host)
    # verts_features_packed is a straight parameter passthrough
    return verts_3d, faces, verts_features


if __name__ == "__main__":
    V, D = 128, 3  # small synthetic shapes (module default is V=1024, D=3)

    key = jax.random.PRNGKey(0)
    k1, k2 = jax.random.split(key)

    # Parameter init mirroring the module: verts_logit = rand(V,2).logit()
    u = jax.random.uniform(k1, (V, 2), dtype=jnp.float32,
                           minval=1e-4, maxval=1.0 - 1e-4)
    verts_logit = jnp.log(u) - jnp.log1p(-u)
    verts_features = jax.random.uniform(k2, (V, D), dtype=jnp.float32)
    boundary = jnp.array([[-1.0, -1.0], [-1.0, 1.0], [1.0, -1.0], [1.0, 1.0]],
                         dtype=jnp.float32)

    verts_3d, faces, feats = screen_triangulation_forward(
        verts_logit, verts_features, boundary)
    jax.block_until_ready(verts_3d)
    jax.block_until_ready(feats)

    # Sanity checks against the reference semantics.
    ref_v2 = jax.nn.sigmoid(verts_logit) * 2.0 - 1.0
    ref_v2 = ref_v2.at[:4].set(boundary)
    ref_v3 = jnp.concatenate([ref_v2, jnp.ones((V, 1), jnp.float32)], axis=-1)
    assert verts_3d.shape == (V, 3)
    assert feats.shape == (V, D)
    assert faces.ndim == 2 and faces.shape[1] == 3
    np.testing.assert_allclose(np.asarray(verts_3d), np.asarray(ref_v3),
                               rtol=1e-6, atol=1e-6)

    print("KERNEL_OK")
</pallas_src>

<mosaic_0001>
module attributes {stable_mosaic.version = 11 : i64} {
  func.func @_verts_kernel(%arg0: i32, %arg1: memref<2x128xf32, #tpu.memory_space<vmem>>, %arg2: memref<2x4xf32, #tpu.memory_space<vmem>>, %arg3: memref<3x128xf32, #tpu.memory_space<vmem>>, %arg4: memref<2x128xf32, #tpu.memory_space<vmem>>) attributes {dimension_semantics = [#tpu.dimension_semantics<arbitrary>], iteration_bounds = array<i64: 1>, scalar_prefetch = 0 : i64, scratch_operands = 0 : i64, tpu.core_type = #tpu.core_type<tc>, window_params = [{pipeline_mode = #tpu.pipeline_mode<synchronous>, transform_indices = @transform_0, window_bounds = array<i64: 2, 128>}, {pipeline_mode = #tpu.pipeline_mode<synchronous>, transform_indices = @transform_1, window_bounds = array<i64: 2, 4>}, {pipeline_mode = #tpu.pipeline_mode<synchronous>, transform_indices = @transform_2, window_bounds = array<i64: 3, 128>}, {pipeline_mode = #tpu.pipeline_mode<synchronous>, transform_indices = @transform_3, window_bounds = array<i64: 2, 128>}]} {
    %c0 = arith.constant 0 : index
    %c0_0 = arith.constant 0 : index
    %0 = vector.load %arg1[%c0, %c0_0] : memref<2x128xf32, #tpu.memory_space<vmem>>, vector<2x128xf32>
    %1 = arith.negf %0 : vector<2x128xf32>
    %2 = math.exp %1 : vector<2x128xf32>
    %cst = arith.constant 1.000000e+00 : f32
    %3 = vector.broadcast %cst : f32 to vector<2x128xf32>
    %4 = arith.addf %3, %2 : vector<2x128xf32>
    %5 = arith.divf %3, %4 : vector<2x128xf32>
    %cst_1 = arith.constant 2.000000e+00 : f32
    %6 = vector.broadcast %cst_1 : f32 to vector<2x128xf32>
    %7 = arith.mulf %5, %6 : vector<2x128xf32>
    %cst_2 = arith.constant 1.000000e+00 : f32
    %8 = vector.broadcast %cst_2 : f32 to vector<2x128xf32>
    %9 = arith.subf %7, %8 : vector<2x128xf32>
    %cst_3 = arith.constant 1.000000e+00 : f32
    %10 = vector.broadcast %cst_3 : f32 to vector<1x128xf32>
    %11 = tpu.concatenate %9, %10 in 0 : vector<2x128xf32>, vector<1x128xf32> -> vector<3x128xf32>
    %c0_4 = arith.constant 0 : index
    %c0_5 = arith.constant 0 : index
    %12 = vector.load %arg3[%c0_4, %c0_5] : memref<3x128xf32, #tpu.memory_space<vmem>>, vector<3x128xf32>
    tpu.vector_store %arg3[%c0_4, %c0_5], %11 {strides = array<i32>} : memref<3x128xf32, #tpu.memory_space<vmem>>, vector<3x128xf32>,
    %c0_6 = arith.constant 0 : index
    %c0_7 = arith.constant 0 : index
    %13 = vector.load %arg4[%c0_6, %c0_7] : memref<2x128xf32, #tpu.memory_space<vmem>>, vector<2x128xf32>
    tpu.vector_store %arg4[%c0_6, %c0_7], %9 {strides = array<i32>} : memref<2x128xf32, #tpu.memory_space<vmem>>, vector<2x128xf32>,
    %c0_8 = arith.constant 0 : index
    %c0_9 = arith.constant 0 : index
    %14 = vector.load %arg2[%c0_8, %c0_9] : memref<2x4xf32, #tpu.memory_space<vmem>>, vector<2x4xf32>
    %c0_10 = arith.constant 0 : index
    %c0_11 = arith.constant 0 : index
    %15 = vector.load %arg3[%c0_10, %c0_11] : memref<3x128xf32, #tpu.memory_space<vmem>>, vector<2x4xf32>
    tpu.vector_store %arg3[%c0_10, %c0_11], %14 {strides = array<i32>} : memref<3x128xf32, #tpu.memory_space<vmem>>, vector<2x4xf32>,
    %c0_12 = arith.constant 0 : index
    %c0_13 = arith.constant 0 : index
    %16 = vector.load %arg4[%c0_12, %c0_13] : memref<2x128xf32, #tpu.memory_space<vmem>>, vector<2x4xf32>
    tpu.vector_store %arg4[%c0_12, %c0_13], %14 {strides = array<i32>} : memref<2x128xf32, #tpu.memory_space<vmem>>, vector<2x4xf32>,
    return
  }
  func.func @transform_0(%arg0: i32) -> (i32, i32) {
    %c0_i32 = arith.constant 0 : i32
    %c0_i32_0 = arith.constant 0 : i32
    %c0_i32_1 = arith.constant 0 : i32
    return %c0_i32, %c0_i32_0 : i32, i32
  }
  func.func @transform_1(%arg0: i32) -> (i32, i32) {
    %c0_i32 = arith.constant 0 : i32
    %c0_i32_0 = arith.constant 0 : i32
    %c0_i32_1 = arith.constant 0 : i32
    return %c0_i32, %c0_i32_0 : i32, i32
  }
  func.func @transform_2(%arg0: i32) -> (i32, i32) {
    %c0_i32 = arith.constant 0 : i32
    %c0_i32_0 = arith.constant 0 : i32
    %c0_i32_1 = arith.constant 0 : i32
    return %c0_i32, %c0_i32_0 : i32, i32
  }
  func.func @transform_3(%arg0: i32) -> (i32, i32) {
    %c0_i32 = arith.constant 0 : i32
    %c0_i32_0 = arith.constant 0 : i32
    %c0_i32_1 = arith.constant 0 : i32
    return %c0_i32, %c0_i32_0 : i32, i32
  }
}

</mosaic_0001>

<bundles_post_ra>
// kernel: _compute_verts.1
= control target key start
LH: loop header
LB: loop body
LE: loop exit
PB: predicated region body
PF: predicated region fallthrough
CT: control target
= control target key end

     0   :  { %9 = vsyncpa [#allocation3], 0  ;;  %s146_s0 = inlined_call_operand.vmem [shape: f32[2,128], index: 0, kind: input, shape index: {}]   ;;  %s147_s1 = inlined_call_operand.vmem [shape: f32[2,4], index: 1, kind: input, shape index: {}]   ;;  %s148_s2 = inlined_call_operand.hbm [shape: f32[3,128], index: 2, kind: output, shape index: {0}]   ;;  %s149_s3 = inlined_call_operand.hbm [shape: f32[2,128], index: 3, kind: output, shape index: {1}]  }
   0x1   :  { %v15_v0 = vld [vmem:[%s146_s0] sm:$0x3] }
   0x2   :  { %v60_v1 = vmul.f32 -1.442695, %v15_v0 }
   0x3   :  { %10 = vsyncpa [#allocation5], 0  ;;  %s112_s14 = smov [#allocation4]   ;;  %vm24_vm0 = vcmask 1041408   ;;  %s113_s16 = smov [#allocation2]   ;;  %vm29_vm1 = vcmask 25600  }
   0x4   :  { %64 = vpow2.f32 %v60_v1  ;;  %s48_s15 = sshll.u32 %s112_s14, 4  ;;  %s38_s17 = sshll.u32 %s113_s16, 4  ;;  %v28_v7 = vld [vmem:[%s147_s1] sm:$0x3]  ;;  %s49_s15 = int_to_ptr.vmem [resolvable:$true] %s48_s15  ;;  %s39_s17 = int_to_ptr.vmem [resolvable:$true] %s38_s17 }
   0x5   :  { %s68_s0 = scalar_lea.vmem %s49_s15, 32  ;;  %p73_p1 = scmp.lt.s32.totalorder %s49_s15, %s49_s15 }
   0x6   :  { %p69_p0 = scmp.ne.s32.totalorder %s49_s15, %s68_s0  ;;  %p74_p2 = scmp.lt.s32.totalorder %s68_s0, %s68_s0 }
   0x8   :  { %p75_p3 = por %p74_p2, %p73_p1 }
   0xa   :  { %p76_p4 = pnand %p75_p3, %p69_p0 }
  0x11   :  { %v65_v2 = vpop.eup %64 }
  0x12   :  { %v19_v3 = vadd.f32 1.0, %v65_v2 }
  0x14   :  { %66 = vrcp.f32 %v19_v3 }
  0x21   :  { %v67_v4 = vpop.eup %66 }
  0x22   :  { %v22_v5 = vmul.f32 2.0, %v67_v4 }
  0x24   :  { %v61_v6 = vadd.f32 -1.0, %v22_v5 }
  0x26   :  { %v25_v8 = vsel %vm24_vm0, %v61_v6, 1.0  ;;  %27 = vst [vmem:[#allocation4] sm:$0x3] %v61_v6 }
  0x27   :  { %26 = vst [vmem:[#allocation2] sm:$0x7] %v25_v8  ;;  %31 = vst.msk [vmem:[#allocation4] sm:$0x3] %vm29_vm1, %v28_v7 }
  0x28   :  { %30 = vst.msk [vmem:[#allocation2] sm:$0x3] %vm29_vm1, %v28_v7 }
  0x29   :  { %79 = shalt.err (!%p76_p4)
}
  0x2a   :  { %51 = dma.vmem_to_hbm [thread:$0]  %s49_s15, 32, %s149_s3, [#allocation5]  }
  0x2b   :  { %s88_s1 = scalar_lea.vmem %s39_s17, 64  ;;  %p93_p6 = scmp.lt.s32.totalorder %s39_s17, %s39_s17 }
  0x2c   :  { %p89_p5 = scmp.ne.s32.totalorder %s39_s17, %s88_s1  ;;  %p94_p7 = scmp.lt.s32.totalorder %s88_s1, %s88_s1 }
  0x2e   :  { %p95_p8 = por %p94_p7, %p93_p6 }
  0x30   :  { %p96_p9 = pnand %p95_p8, %p89_p5 }
  0x32   :  { %99 = shalt.err (!%p96_p9)
}
  0x33   :  { %41 = dma.vmem_to_hbm [thread:$0]  %s39_s17, 64, %s148_s2, [#allocation3]  }
  0x34   :  { %108 = dma.done.wait [#allocation3], 64  }
  0x35   :  { %109 = vsyncadd [#allocation3], 4294967232 }
  0x36   :  { %110 = dma.done.wait [#allocation5], 32  }
  0x37   :  { %111 = vsyncadd [#allocation5], 4294967264 }
  0x38   :  { %58 = vsyncpa [#allocation3], 1 }
  0x39   :  { %59 = vsyncpa [#allocation5], 1 }

</bundles_post_ra>
